<compile_context>
chip_gen: v6e
topology: v6e:2x2x1
jax: 0.10.0
libtpu: 0.0.40
codegen_flags: <defaults>
</compile_context>

<pallas_src>
import jax
import jax.numpy as jnp
from jax.experimental import pallas as pl
from jax.experimental.pallas import tpu as pltpu

F_DIM = 30                       # fixed by nn.Linear(in_features=30, out_features=30)
T_TILE = 16384                   # lane-axis tile (multiple of 128); ~1.9 MiB/block in f32
TARGET_BLOCK_ELEMS = F_DIM * T_TILE   # ~491K elems per block -> used to pick the batch tile


def _attention_kernel(x_ref, w_ref, b_ref, o_ref):
    # x_ref : (Bt, F, Tt)  one (batch-tile, T-tile) block of inputs, native layout
    # w_ref : (F, F)       PyTorch Linear weight (out_features, in_features)
    # b_ref : (F, 1)       PyTorch Linear bias as a column vector
    # o_ref : (Bt, F, Tt)  probs * inputs block (lane-dense stores)
    x = x_ref[...].astype(jnp.float32)
    w = w_ref[...].astype(jnp.float32)
    b = b_ref[...].astype(jnp.float32)

    bt = x.shape[0]
    f = w.shape[0]

    # logits[b, o, t] = sum_f W[o, f] * x[b, f, t] + bias[o]   (no in-kernel weight transpose)
    if bt == 1:
        logits = (jnp.dot(w, x[0], preferred_element_type=jnp.float32) + b)[None]
    else:
        wb = jnp.broadcast_to(w, (bt, f, f))
        logits = jax.lax.dot_general(
            wb, x,
            dimension_numbers=(((2,), (1,)), ((0,), (0,))),   # batched: contract over f
            preferred_element_type=jnp.float32,
        ) + b

    # Softmax over the output-feature axis (axis 1 here == PyTorch Softmax(dim=2)).
    m = jnp.max(logits, axis=1, keepdims=True)
    e = jnp.exp(logits - m)
    denom = jnp.sum(e, axis=1, keepdims=True)
    probs = e / denom            # exact divide; kernel is memory-bound so this is free

    # Gate the original inputs (feature axes already aligned in native layout).
    o_ref[...] = (probs * x).astype(o_ref.dtype)


def attention3d_block(inputs, weight, bias, *, t_tile=T_TILE,
                      target_block_elems=TARGET_BLOCK_ELEMS):
    """inputs: (B, 30, T); weight: (30, 30); bias: (30,). Returns (B, 30, T)."""
    B, F, T = inputs.shape
    assert F == F_DIM, f"feature dim must be {F_DIM}, got {F}"

    # Lane (T) tile: either the full T or a multiple of 128 (BlockSpec constraint).
    tt = T if T <= t_tile else t_tile
    # Batch tile: amortize the fixed per-grid-step overhead when the T tile is small,
    # while keeping each block near ~target_block_elems (~1.9 MiB f32) so that
    # double-buffered in+out stays under the v5e 16 MiB scoped-VMEM default.
    bt = max(1, min(B, target_block_elems // max(1, F * tt)))

    grid = (pl.cdiv(B, bt), pl.cdiv(T, tt))
    b2d = bias.reshape(F, 1)     # column vector -> broadcasts over the T lanes

    return pl.pallas_call(
        _attention_kernel,
        out_shape=jax.ShapeDtypeStruct((B, F, T), inputs.dtype),
        grid_spec=pltpu.PrefetchScalarGridSpec(
            num_scalar_prefetch=0,
            grid=grid,
            in_specs=[
                # (batch-tile, T-tile) block of inputs, native layout.
                pl.BlockSpec((bt, F, tt), lambda bi, ti: (bi, 0, ti)),
                # weight / bias: same full block every step (stays resident in VMEM).
                pl.BlockSpec((F, F), lambda bi, ti: (0, 0)),
                pl.BlockSpec((F, 1), lambda bi, ti: (0, 0)),
            ],
            out_specs=pl.BlockSpec((bt, F, tt), lambda bi, ti: (bi, 0, ti)),
        ),
        compiler_params=pltpu.CompilerParams(
            # Both grid axes independent -> megacore sharding (2 TCs on v7x).
            dimension_semantics=("parallel", "parallel"),
        ),
    )(inputs, weight, b2d)


def reference(inputs, weight, bias):
    """Pure-JAX reference mirroring the PyTorch forward."""
    x = jnp.transpose(inputs, (0, 2, 1))                  # (B, T, F)
    y = jnp.einsum("btf,of->bto", x, weight) + bias       # Linear
    p = jax.nn.softmax(y, axis=2)                         # Softmax(dim=2)
    return jnp.transpose(p, (0, 2, 1)) * inputs           # gate in (B, F, T)


if __name__ == "__main__":
    key = jax.random.PRNGKey(0)
    k_x, k_w, k_b, k_x2, k_x3 = jax.random.split(key, 5)

    # PyTorch-style uniform(-1/sqrt(fan_in), +1/sqrt(fan_in)) init.
    bound = 1.0 / jnp.sqrt(jnp.float32(F_DIM))
    weight = jax.random.uniform(k_w, (F_DIM, F_DIM), jnp.float32, -bound, bound)
    bias = jax.random.uniform(k_b, (F_DIM,), jnp.float32, -bound, bound)

    # Small primary shape consistent with the module: (B, 30, T).
    B, T = 2, 8
    inputs = jax.random.normal(k_x, (B, F_DIM, T), dtype=jnp.float32)
    out = jax.block_until_ready(attention3d_block(inputs, weight, bias))
    ref = reference(inputs, weight, bias)
    assert out.shape == (B, F_DIM, T), out.shape
    assert jnp.allclose(out, ref, atol=1e-5, rtol=1e-5), float(jnp.max(jnp.abs(out - ref)))

    # Larger T on the default (single-tile, bt>1) path.
    T2 = 640
    inputs2 = jax.random.normal(k_x2, (B, F_DIM, T2), dtype=jnp.float32)
    out2 = jax.block_until_ready(attention3d_block(inputs2, weight, bias))
    ref2 = reference(inputs2, weight, bias)
    assert out2.shape == (B, F_DIM, T2), out2.shape
    assert jnp.allclose(out2, ref2, atol=1e-5, rtol=1e-5), float(jnp.max(jnp.abs(out2 - ref2)))

    # Force the tiled path with partial T block AND partial batch block
    # (t_tile=256 -> T tiles of 256/256/128-pad, target -> bt=2 over B=3).
    B3, T3 = 3, 640
    inputs3 = jax.random.normal(k_x3, (B3, F_DIM, T3), dtype=jnp.float32)
    out3 = jax.block_until_ready(
        attention3d_block(inputs3, weight, bias, t_tile=256,
                          target_block_elems=F_DIM * 256 * 2))
    ref3 = reference(inputs3, weight, bias)
    assert out3.shape == (B3, F_DIM, T3), out3.shape
    assert jnp.allclose(out3, ref3, atol=1e-5, rtol=1e-5), float(jnp.max(jnp.abs(out3 - ref3)))

    print("KERNEL_OK")
</pallas_src>

<mosaic_0001>
module attributes {stable_mosaic.version = 11 : i64} {
  func.func @_attention_kernel(%arg0: i32, %arg1: i32, %arg2: memref<2x30x8xf32, #tpu.memory_space<vmem>>, %arg3: memref<30x30xf32, #tpu.memory_space<vmem>>, %arg4: memref<30x1xf32, #tpu.memory_space<vmem>>, %arg5: memref<2x30x8xf32, #tpu.memory_space<vmem>>) attributes {dimension_semantics = [#tpu.dimension_semantics<parallel>, #tpu.dimension_semantics<parallel>], iteration_bounds = array<i64: 1, 1>, scalar_prefetch = 0 : i64, scratch_operands = 0 : i64, tpu.core_type = #tpu.core_type<tc>, window_params = [{transform_indices = @transform_0, window_bounds = array<i64: 2, 30, 8>}, {pipeline_mode = #tpu.pipeline_mode<synchronous>, transform_indices = @transform_1, window_bounds = array<i64: 30, 30>}, {pipeline_mode = #tpu.pipeline_mode<synchronous>, transform_indices = @transform_2, window_bounds = array<i64: 30, 1>}, {transform_indices = @transform_3, window_bounds = array<i64: 2, 30, 8>}]} {
    %c0 = arith.constant 0 : index
    %c0_0 = arith.constant 0 : index
    %c0_1 = arith.constant 0 : index
    %0 = vector.load %arg2[%c0, %c0_0, %c0_1] : memref<2x30x8xf32, #tpu.memory_space<vmem>>, vector<2x30x8xf32>
    %c0_2 = arith.constant 0 : index
    %c0_3 = arith.constant 0 : index
    %1 = vector.load %arg3[%c0_2, %c0_3] : memref<30x30xf32, #tpu.memory_space<vmem>>, vector<30x30xf32>
    %c0_4 = arith.constant 0 : index
    %c0_5 = arith.constant 0 : index
    %2 = vector.load %arg4[%c0_4, %c0_5] : memref<30x1xf32, #tpu.memory_space<vmem>>, vector<30x1xf32>
    %3 = vector.shape_cast %1 : vector<30x30xf32> to vector<1x30x30xf32>
    %4 = vector.broadcast %3 : vector<1x30x30xf32> to vector<2x30x30xf32>
    %cst = arith.constant dense<0.000000e+00> : vector<2x30x8xf32>
    %5 = tpu.matmul %4, %0, %cst {dimension_numbers = #tpu.dot_dimension_numbers<[2], [1], [1], [2], [0, 0, 0, 1, 1, 2], [0], [0]>} : vector<2x30x30xf32>, vector<2x30x8xf32>, vector<2x30x8xf32> -> vector<2x30x8xf32>
    %6 = vector.shape_cast %2 : vector<30x1xf32> to vector<1x30x1xf32>
    %7 = vector.broadcast %6 : vector<1x30x1xf32> to vector<2x30x8xf32>
    %8 = arith.addf %5, %7 : vector<2x30x8xf32>
    %cst_6 = arith.constant dense<0xFF800000> : vector<2x8xf32>
    %9 = vector.multi_reduction <maximumf>, %8, %cst_6 [1] : vector<2x30x8xf32> to vector<2x8xf32>
    %10 = vector.shape_cast %9 : vector<2x8xf32> to vector<2x1x8xf32>
    %11 = vector.broadcast %10 : vector<2x1x8xf32> to vector<2x30x8xf32>
    %12 = arith.subf %8, %11 : vector<2x30x8xf32>
    %13 = math.exp %12 : vector<2x30x8xf32>
    %cst_7 = arith.constant dense<0.000000e+00> : vector<2x8xf32>
    %14 = vector.multi_reduction <add>, %13, %cst_7 [1] : vector<2x30x8xf32> to vector<2x8xf32>
    %15 = vector.shape_cast %14 : vector<2x8xf32> to vector<2x1x8xf32>
    %16 = vector.broadcast %15 : vector<2x1x8xf32> to vector<2x30x8xf32>
    %17 = arith.divf %13, %16 : vector<2x30x8xf32>
    %18 = arith.mulf %17, %0 : vector<2x30x8xf32>
    %c0_8 = arith.constant 0 : index
    %c0_9 = arith.constant 0 : index
    %c0_10 = arith.constant 0 : index
    %19 = vector.load %arg5[%c0_8, %c0_9, %c0_10] : memref<2x30x8xf32, #tpu.memory_space<vmem>>, vector<2x30x8xf32>
    tpu.vector_store %arg5[%c0_8, %c0_9, %c0_10], %18 {strides = array<i32>} : memref<2x30x8xf32, #tpu.memory_space<vmem>>, vector<2x30x8xf32>,
    return
  }
  func.func @transform_0(%arg0: i32, %arg1: i32) -> (i32, i32, i32) {
    %c0_i32 = arith.constant 0 : i32
    %c0_i32_0 = arith.constant 0 : i32
    return %arg0, %c0_i32, %arg1 : i32, i32, i32
  }
  func.func @transform_1(%arg0: i32, %arg1: i32) -> (i32, i32) {
    %c0_i32 = arith.constant 0 : i32
    %c0_i32_0 = arith.constant 0 : i32
    %c0_i32_1 = arith.constant 0 : i32
    return %c0_i32, %c0_i32_0 : i32, i32
  }
  func.func @transform_2(%arg0: i32, %arg1: i32) -> (i32, i32) {
    %c0_i32 = arith.constant 0 : i32
    %c0_i32_0 = arith.constant 0 : i32
    %c0_i32_1 = arith.constant 0 : i32
    return %c0_i32, %c0_i32_0 : i32, i32
  }
  func.func @transform_3(%arg0: i32, %arg1: i32) -> (i32, i32, i32) {
    %c0_i32 = arith.constant 0 : i32
    %c0_i32_0 = arith.constant 0 : i32
    return %arg0, %c0_i32, %arg1 : i32, i32, i32
  }
}

</mosaic_0001>

<bundles_post_ra>
// kernel: tpu_custom_call.1
= control target key start
LH: loop header
LB: loop body
LE: loop exit
PB: predicated region body
PF: predicated region fallthrough
CT: control target
= control target key end

     0   :  { %vm63_vm0 = vcmask 1045504   ;;  %v425_v3 = vmov 0   ;;  %vm50_vm1 = vcmask 244736   ;;  %vm240_vm2 = vcmask 64512   ;;  %s590_s0 = inlined_call_operand.vmem [shape: f32[2,30,8], index: 0, kind: input, shape index: {}]   ;;  %s591_s1 = inlined_call_operand.vmem [shape: f32[30,30], index: 1, kind: input, shape index: {}]   ;;  %s592_s2 = inlined_call_operand.vmem [shape: f32[30,1], index: 2, kind: input, shape index: {}]   ;;  %s593_s3 = inlined_call_operand.vmem [shape: f32[2,30,8], index: 3, kind: output, shape index: {}]  }
   0x1   :  { %v449_v0 = vld [vmem:[%s590_s0 + $0x18] sm:$0x3f]  ;;  %v459_v2 = vld [vmem:[%s590_s0 + $0x10] sm:$0xff]  ;;  %403 = vset.pattern.permute.xlu0 %v425_v3  ;;  %404 = vset.pattern.permute.xlu1 %v425_v3  ;;  %v473_v5 = vld [vmem:[%s590_s0 + $0x8] sm:$0xff]  ;;  %vm245_vm3 = vcmask 62464  }
   0x2   :  { %v454_v1 = vld [vmem:[%s590_s0 + $0x38] sm:$0x3f]  ;;  %374 = vmatprep.subr.msk.mxu0 %vm63_vm0, %v449_v0  ;;  %v466_v4 = vld [vmem:[%s590_s0 + $0x30] sm:$0xff]  ;;  %v478_v6 = vld [vmem:[%s590_s0 + $0x28] sm:$0xff] }
   0x3   :  { %388 = vmatprep.subr.msk.mxu1 %vm63_vm0, %v454_v1  ;;  %375 = vmatpush3.msk.msra.mxu0 %vm63_vm0, %v449_v0  ;;  %v487_v7 = vld [vmem:[%s590_s0] sm:$0xff]  ;;  %v23_v10 = vld [vmem:[%s591_s1 + $0x8] sm:$0xff]  ;;  %v24_v11 = vld [vmem:[%s591_s1 + $0x10] sm:$0xff] }
   0x4   :  { %389 = vmatpush3.msk.msra.mxu1 %vm63_vm0, %v454_v1  ;;  %376 = vmatprep.subr.mxu0 %v459_v2  ;;  %v492_v8 = vld [vmem:[%s590_s0 + $0x20] sm:$0xff]  ;;  %v28_v13 = vld [vmem:[%s592_s2 + $0x10] sm:$0xff]  ;;  %v25_v14 = vld [vmem:[%s591_s1 + $0x18] sm:$0x3f] }
   0x5   :  { %390 = vmatprep.subr.mxu1 %v466_v4  ;;  %377 = vmatpush3.msra.mxu0 %v459_v2  ;;  %v22_v9 = vld [vmem:[%s591_s1] sm:$0xff]  ;;  %v27_v15 = vld [vmem:[%s592_s2 + $0x8] sm:$0xff]  ;;  %v29_v16 = vld [vmem:[%s592_s2 + $0x18] sm:$0x3f] }
   0x6   :  { %391 = vmatpush3.msra.mxu1 %v466_v4  ;;  %378 = vmatprep.subr.mxu0 %v473_v5  ;;  %v26_v12 = vld [vmem:[%s592_s2] sm:$0xff] }
   0x7   :  { %392 = vmatprep.subr.mxu1 %v478_v6  ;;  %379 = vmatpush3.msra.mxu0 %v473_v5 }
   0x8   :  { %393 = vmatpush3.msra.mxu1 %v478_v6  ;;  %380 = vmatprep.subr.mxu0 %v487_v7 }
   0x9   :  { %394 = vmatprep.subr.mxu1 %v492_v8  ;;  %381 = vmatpush3.msra.mxu0 %v487_v7 }
   0xa   :  { %382 = vmatprep.mubr.msk.f32.mxu0 %vm50_vm1, %v22_v9  ;;  %395 = vmatpush3.msra.mxu1 %v492_v8 }
   0xb   :  { %396 = vmatprep.mubr.msk.f32.mxu1 %vm50_vm1, %v22_v9  ;;  %383 = vmatmul.mubr.msk.f32.vlgmr.msra.gmra.mxu0 %vm50_vm1, %v23_v10 }
   0xc   :  { %397 = vmatmul.mubr.msk.f32.vlgmr.msra.gmra.mxu1 %vm50_vm1, %v23_v10  ;;  %385 = vmatprep.mubr.msk.f32.mxu0 %vm50_vm1, %v24_v11 }
   0xd   :  { %399 = vmatprep.mubr.msk.f32.mxu1 %vm50_vm1, %v24_v11  ;;  %32 = vperm.xlu0 %403, %v26_v12  }
   0xe   :  { %42 = vperm.xlu1 %404, %v28_v13  }
   0xf   :  { %386 = vmatmul.mubr.msk.f32.gmra.mxu0 %vm50_vm1, %v25_v14 }
  0x10   :  { %400 = vmatmul.mubr.msk.f32.gmra.mxu1 %vm50_vm1, %v25_v14 }
  0x11   :  { %37 = vperm.xlu0 %403, %v27_v15  }
  0x12   :  { %47 = vperm.xlu1 %404, %v29_v16  }
  0x88   :  { %v33_v17 = vpop.permute.xlu0 %32 }
  0x89   :  { %v43_v18 = vpop.permute.xlu1 %42 }
  0x8c   :  { %v38_v21 = vpop.permute.xlu0 %37 }
  0x8d   :  { %v48_v24 = vpop.permute.xlu1 %47 }
  0xcb   :  { %v384_v19 = vpop.f32.mrf.mxu0 }
  0xcc   :  { %v398_v20 = vpop.f32.mrf.mxu1  ;;  %v139_v25 = vadd.f32 %v384_v19, %v38_v21 }
  0xcd   :  { %v133_v22 = vpop.f32.mrf.mxu0  ;;  %v227_v26 = vadd.f32 %v398_v20, %v38_v21 }
  0xce   :  { %v221_v23 = vpop.f32.mrf.mxu1  ;;  %v134_v29 = vadd.f32 %v133_v22, %v33_v17  ;;  %v242_v39 = vsel %vm240_vm2, %v139_v25, -inf }
  0xcf   :  { %v387_v27 = vpop.f32.mrf.mxu0  ;;  %v222_v30 = vadd.f32 %v221_v23, %v33_v17  ;;  %v256_v40 = vsel %vm240_vm2, %v227_v26, -inf }
  0xd0   :  { %v401_v28 = vpop.f32.mrf.mxu1  ;;  %v149_v31 = vadd.f32 %v387_v27, %v48_v24  ;;  %v241_v41 = vsel %vm240_vm2, %v134_v29, -inf }
  0xd1   :  { %v237_v32 = vadd.f32 %v401_v28, %v48_v24  ;;  %v143_v33 = vpop.f32.mrf.mxu0  ;;  %v255_v42 = vsel %vm240_vm2, %v222_v30, -inf }
  0xd2   :  { %v231_v34 = vpop.f32.mrf.mxu1  ;;  %v246_v35 = vsel %vm245_vm3, %v149_v31, -inf  ;;  %v144_v37 = vadd.f32 %v143_v33, %v43_v18 }
  0xd3   :  { %v259_v36 = vsel %vm245_vm3, %v237_v32, -inf  ;;  %v232_v38 = vadd.f32 %v231_v34, %v43_v18  ;;  %v247_v45 = vmax.f32 %v242_v39, %v246_v35 }
  0xd4   :  { %v243_v43 = vsel %vm240_vm2, %v144_v37, -inf  ;;  %v260_v46 = vmax.f32 %v256_v40, %v259_v36 }
  0xd5   :  { %v257_v44 = vsel %vm240_vm2, %v232_v38, -inf  ;;  %v244_v47 = vmax.f32 %v241_v41, %v243_v43 }
  0xd6   :  { %v258_v48 = vmax.f32 %v255_v42, %v257_v44 }
  0xd7   :  { %v248_v49 = vmax.f32 %v244_v47, %v247_v45 }
  0xd8   :  { %v261_v50 = vmax.f32 %v258_v48, %v260_v46 }
  0xd9   :  { %v249_v51 = vrot.slane %v248_v49, 4 }
  0xda   :  { %v262_v52 = vrot.slane %v261_v50, 4 }
  0xdb   :  { %v250_v53 = vmax.f32 %v248_v49, %v249_v51 }
  0xdc   :  { %v263_v54 = vmax.f32 %v261_v50, %v262_v52 }
  0xdd   :  { %v251_v55 = vrot.slane %v250_v53, 2 }
  0xde   :  { %v264_v56 = vrot.slane %v263_v54, 2 }
  0xdf   :  { %v252_v57 = vmax.f32 %v250_v53, %v251_v55 }
  0xe0   :  { %v265_v58 = vmax.f32 %v263_v54, %v264_v56 }
  0xe1   :  { %v253_v59 = vrot.slane %v252_v57, 1 }
  0xe2   :  { %v266_v60 = vrot.slane %v265_v58, 1 }
  0xe3   :  { %v254_v61 = vmax.f32 %v252_v57, %v253_v59 }
  0xe4   :  { %v267_v62 = vmax.f32 %v265_v58, %v266_v60 }
  0xe5   :  { %v268_v63 = vsub.f32 %v134_v29, %v254_v61  ;;  %v269_v3 = vsub.f32 %v139_v25, %v254_v61  ;;  %v270_v9 = vsub.f32 %v144_v37, %v254_v61  ;;  %v271_v10 = vsub.f32 %v149_v31, %v254_v61 }
  0xe6   :  { %v272_v11 = vsub.f32 %v222_v30, %v267_v62  ;;  %v273_v12 = vsub.f32 %v227_v26, %v267_v62  ;;  %v274_v16 = vsub.f32 %v232_v38, %v267_v62  ;;  %v275_v18 = vsub.f32 %v237_v32, %v267_v62 }
  0xe7   :  { %v276_v13 = vmul.f32 1.442695, %v268_v63  ;;  %v278_v14 = vmul.f32 1.442695, %v269_v3  ;;  %v280_v15 = vmul.f32 1.442695, %v270_v9 }
  0xe8   :  { %v282_v17 = vmul.f32 1.442695, %v271_v10  ;;  %v284_v19 = vmul.f32 1.442695, %v272_v11  ;;  %v286_v20 = vmul.f32 1.442695, %v273_v12 }
  0xe9   :  { %405 = vpow2.f32 %v276_v13  ;;  %v288_v21 = vmul.f32 1.442695, %v274_v16  ;;  %v290_v22 = vmul.f32 1.442695, %v275_v18 }
  0xea   :  { %407 = vpow2.f32 %v278_v14 }
  0xeb   :  { %409 = vpow2.f32 %v280_v15 }
  0xec   :  { %411 = vpow2.f32 %v282_v17 }
  0xed   :  { %413 = vpow2.f32 %v284_v19 }
  0xee   :  { %415 = vpow2.f32 %v286_v20 }
  0xef   :  { %417 = vpow2.f32 %v288_v21 }
  0xf0   :  { %419 = vpow2.f32 %v290_v22 }
  0xf6   :  { %v406_v23 = vpop.eup %405 }
  0xf7   :  { %v408_v24 = vpop.eup %407  ;;  %v292_v25 = vsel %vm240_vm2, %v406_v23, 0.0 }
  0xf8   :  { %v410_v26 = vpop.eup %409  ;;  %v293_v27 = vsel %vm240_vm2, %v408_v24, 0.0 }
  0xf9   :  { %v412_v28 = vpop.eup %411  ;;  %v294_v29 = vadd.f32 %v293_v27, %v292_v25  ;;  %v295_v31 = vsel %vm240_vm2, %v410_v26, 0.0 }
  0xfa   :  { %v414_v30 = vpop.eup %413  ;;  %v297_v36 = vsel %vm245_vm3, %v412_v28, 0.0 }
  0xfb   :  { %v416_v32 = vpop.eup %415  ;;  %v296_v33 = vadd.f32 %v295_v31, %v294_v29  ;;  %v305_v34 = vsel %vm240_vm2, %v414_v30, 0.0 }
  0xfc   :  { %v418_v35 = vpop.eup %417  ;;  %v306_v37 = vsel %vm240_vm2, %v416_v32, 0.0 }
  0xfd   :  { %v420_v38 = vpop.eup %419  ;;  %v298_v39 = vadd.f32 %v297_v36, %v296_v33  ;;  %v307_v40 = vadd.f32 %v306_v37, %v305_v34  ;;  %v308_v41 = vsel %vm240_vm2, %v418_v35, 0.0 }
  0xfe   :  { %v310_v44 = vsel %vm245_vm3, %v420_v38, 0.0 }
  0xff   :  { %v299_v42 = vrot.slane %v298_v39, 4  ;;  %v309_v43 = vadd.f32 %v308_v41, %v307_v40 }
 0x101   :  { %v300_v45 = vadd.f32 %v299_v42, %v298_v39  ;;  %v311_v46 = vadd.f32 %v310_v44, %v309_v43 }
 0x103   :  { %v301_v47 = vrot.slane %v300_v45, 2  ;;  %v312_v48 = vrot.slane %v311_v46, 4 }
 0x105   :  { %v302_v49 = vadd.f32 %v301_v47, %v300_v45  ;;  %v313_v50 = vadd.f32 %v312_v48, %v311_v46 }
 0x107   :  { %v303_v51 = vrot.slane %v302_v49, 1  ;;  %v314_v52 = vrot.slane %v313_v50, 2 }
 0x109   :  { %v304_v53 = vadd.f32 %v303_v51, %v302_v49  ;;  %v315_v54 = vadd.f32 %v314_v52, %v313_v50 }
 0x10b   :  { %421 = vrcp.f32 %v304_v53  ;;  %v316_v55 = vrot.slane %v315_v54, 1 }
 0x10d   :  { %v317_v56 = vadd.f32 %v316_v55, %v315_v54 }
 0x10f   :  { %423 = vrcp.f32 %v317_v56 }
 0x118   :  { %v422_v57 = vpop.eup %421 }
 0x119   :  { %v319_v58 = vmul.f32 %v422_v57, %v406_v23  ;;  %v320_v59 = vmul.f32 %v422_v57, %v408_v24  ;;  %v321_v60 = vmul.f32 %v422_v57, %v410_v26  ;;  %v322_v61 = vmul.f32 %v422_v57, %v412_v28 }
 0x11b   :  { %v328_v62 = vmul.f32 %v319_v58, %v487_v7  ;;  %v329_v63 = vmul.f32 %v320_v59, %v473_v5  ;;  %v330_v3 = vmul.f32 %v321_v60, %v459_v2  ;;  %v331_v9 = vmul.f32 %v322_v61, %v449_v0 }
 0x11c   :  { %v424_v10 = vpop.eup %423 }
 0x11d   :  { %336 = vst.msk [vmem:[%s593_s3] sm:$0xff] %vm240_vm2, %v328_v62  ;;  %337 = vst.msk [vmem:[%s593_s3 + $0x8] sm:$0xff] %vm240_vm2, %v329_v63  ;;  %v324_v0 = vmul.f32 %v424_v10, %v414_v30  ;;  %v325_v2 = vmul.f32 %v424_v10, %v416_v32  ;;  %v326_v5 = vmul.f32 %v424_v10, %v418_v35 }
 0x11e   :  { %338 = vst.msk [vmem:[%s593_s3 + $0x10] sm:$0xff] %vm240_vm2, %v330_v3  ;;  %v327_v7 = vmul.f32 %v424_v10, %v420_v38 }
 0x11f   :  { %339 = vst.msk [vmem:[%s593_s3 + $0x18] sm:$0x3f] %vm245_vm3, %v331_v9  ;;  %v332_v11 = vmul.f32 %v324_v0, %v492_v8  ;;  %v333_v12 = vmul.f32 %v325_v2, %v478_v6  ;;  %v334_v13 = vmul.f32 %v326_v5, %v466_v4 }
 0x120   :  { %v335_v14 = vmul.f32 %v327_v7, %v454_v1 }
 0x121   :  { %340 = vst.msk [vmem:[%s593_s3 + $0x20] sm:$0xff] %vm240_vm2, %v332_v11  ;;  %341 = vst.msk [vmem:[%s593_s3 + $0x28] sm:$0xff] %vm240_vm2, %v333_v12 }
 0x122   :  { %342 = vst.msk [vmem:[%s593_s3 + $0x30] sm:$0xff] %vm240_vm2, %v334_v13 }
 0x123   :  { %343 = vst.msk [vmem:[%s593_s3 + $0x38] sm:$0x3f] %vm245_vm3, %v335_v14 }

</bundles_post_ra>
